<compile_context>
chip_gen: v5e
topology: v5e:2x2
jax: 0.10.0
libtpu: 0.0.40
codegen_flags: <defaults>
</compile_context>

<pallas_src>
import functools

import jax
import jax.numpy as jnp
from jax.experimental import pallas as pl
from jax.experimental.pallas import tpu as pltpu


def _round_up(x, m):
    return ((x + m - 1) // m) * m


def _vmem_limit_bytes():
    """Per-generation VMEM budget: stay well inside v7x's 64 MiB, use more on
    v5e/v6e (128 MiB physical)."""
    try:
        cap = int(pltpu.get_tpu_info().vmem_capacity_bytes)
    except Exception:  # pragma: no cover - conservative fallback
        cap = 64 * 1024 * 1024
    return max(32 * 1024 * 1024, min(cap - 16 * 1024 * 1024, 96 * 1024 * 1024))


def _maybe_pad(x, target_shape):
    pads = tuple((0, t - s) for s, t in zip(x.shape, target_shape))
    if all(p == (0, 0) for p in pads):
        return x                      # no host-side pad pass when already aligned
    return jnp.pad(x, pads)


# ---------------------------------------------------------------------------
# Stage 1: hidden = text @ W   (rows of all batches collapsed together).
# A "ones" column is written into the zero-padded F_out region so that the
# stage-2 matmul produces the adjacency row-sum on the MXU for free.
# ---------------------------------------------------------------------------
def _hidden_kernel(x_ref, w_ref, h_ref, *, ones_col):
    # x_ref: (TR, F_in_p) f32   w_ref: (F_in_p, F_out_p) bf16   h_ref: bf16
    x = x_ref[...].astype(jnp.bfloat16)
    h = jnp.dot(x, w_ref[...], preferred_element_type=jnp.float32)
    col = jax.lax.broadcasted_iota(jnp.int32, h.shape, 1)
    h = jnp.where(col == ones_col, 1.0, h)          # ones column -> MXU row-sum
    h_ref[...] = h.astype(h_ref.dtype)


# ---------------------------------------------------------------------------
# Stage 2: out = (adj @ hidden) / (rowsum(adj) + 1) + bias   (per batch, tiled).
# Accumulates directly into the resident f32 output block.
# ---------------------------------------------------------------------------
def _aggregate_kernel(adj_ref, hid_ref, b_ref, out_ref, *,
                      tk, ones_col, hidden_resident):
    # adj_ref: (TM, TK) f32     hid_ref: (N_col_p | TK, F_out_p) bf16
    # b_ref:   (1, F_out_p) f32 out_ref: (TM, F_out_p) f32 (resident accumulator)
    k = pl.program_id(2)

    @pl.when(k == 0)
    def _():
        out_ref[...] = jnp.zeros_like(out_ref)

    adj = adj_ref[...].astype(jnp.bfloat16)          # cast per tile (MXU feed)
    if hidden_resident:
        off = pl.multiple_of(k * tk, 128)
        hid = hid_ref[pl.ds(off, tk), :]
    else:
        hid = hid_ref[...]

    out_ref[...] += jnp.dot(adj, hid, preferred_element_type=jnp.float32)

    @pl.when(k == pl.num_programs(2) - 1)
    def _():
        acc = out_ref[...]
        rowsum = acc[:, ones_col:ones_col + 1]       # MXU-computed adj row-sum
        inv = pl.reciprocal(rowsum + 1.0, approx=False)
        out_ref[...] = acc * inv + b_ref[...]


@functools.partial(jax.jit,
                   static_argnames=("tm", "tk", "force_hidden_resident"))
def graph_convolution(text, adj, weight, bias=None, *,
                      tm=512, tk=2048, force_hidden_resident=None):
    """Pallas GCN forward.

    text:   (B, N, F_in)   adj: (B, N, N)   weight: (F_in, F_out)
    bias:   (F_out,) or None
    returns (B, N, F_out) float32
    """
    B, N, F_in = text.shape
    F_out = weight.shape[1]
    assert adj.shape == (B, N, N)
    assert weight.shape[0] == F_in

    limit = _vmem_limit_bytes()
    budget = int(limit * 0.8)

    # --- padded / tiled geometry -------------------------------------------
    f_in_p = _round_up(F_in, 128)                    # lane-dense contraction dim
    if F_out % 128 == 0:                             # need a spare column for the
        f_out_p = F_out + 128                        # MXU row-sum trick
    else:
        f_out_p = _round_up(F_out, 128)
    ones_col = F_out

    tm = max(16, min(tm, _round_up(N, 16)))          # bf16 sublane packing is 16
    tm = _round_up(tm, 16)
    n_row_p = _round_up(N, tm)

    n_col_p = _round_up(N, 128)
    tk_cands = [t for t in (4096, 2048, 1024, 512, 256, 128)
                if t <= min(tk, n_col_p) and n_col_p % t == 0] or [128]

    def s2_bytes(tk_, resident):
        return (2 * tm * tk_ * 4                                   # adj (f32, dbl-buf)
                + 2 * (n_col_p if resident else tk_) * f_out_p * 2  # hidden (bf16)
                + 2 * tm * f_out_p * 4                             # out/accumulator
                + f_out_p * 4)                                     # bias

    if force_hidden_resident is None:
        choice = None
        for resident in (True, False):
            for t in tk_cands:
                if s2_bytes(t, resident) <= budget:
                    choice = (t, resident)
                    break
            if choice is not None:
                break
        tk, hidden_resident = choice if choice is not None else (tk_cands[-1], False)
    else:
        hidden_resident = bool(force_hidden_resident)
        tk = next((t for t in tk_cands if s2_bytes(t, hidden_resident) <= budget),
                  tk_cands[-1])

    # --- pad inputs (keep f32; cast to bf16 inside the kernels) --------------
    text_p = _maybe_pad(text.astype(jnp.float32), (B, n_col_p, f_in_p))
    adj_p = _maybe_pad(adj.astype(jnp.float32), (B, n_row_p, n_col_p))
    w_bf = _maybe_pad(weight.astype(jnp.bfloat16), (f_in_p, f_out_p))  # tiny
    if bias is None:
        bias_p = jnp.zeros((1, f_out_p), jnp.float32)
    else:
        bias_p = _maybe_pad(bias.reshape(1, F_out).astype(jnp.float32),
                            (1, f_out_p))

    # --- stage 1: hidden = text @ W  (rows collapsed across batch) ----------
    bn = B * n_col_p
    tr_cands = [t for t in (1024, 512, 256, 128) if bn % t == 0] or [128]
    for tr in tr_cands:
        if 2 * tr * f_in_p * 4 + 2 * f_in_p * f_out_p * 2 + 2 * tr * f_out_p * 2 <= budget:
            break
    else:
        tr = tr_cands[-1]
    # TODO(synk): add a K-reduction grid axis to stage 1 if F_in*F_out blocks
    # ever approach the VMEM limit (not needed at these model sizes).

    text2d = text_p.reshape(bn, f_in_p)
    cost1 = pl.CostEstimate(
        flops=2 * bn * f_in_p * f_out_p,
        transcendentals=0,
        bytes_accessed=bn * f_in_p * 4 + f_in_p * f_out_p * 2 + bn * f_out_p * 2)
    hidden2d = pl.pallas_call(
        functools.partial(_hidden_kernel, ones_col=ones_col),
        out_shape=jax.ShapeDtypeStruct((bn, f_out_p), jnp.bfloat16),
        grid_spec=pltpu.PrefetchScalarGridSpec(
            num_scalar_prefetch=0,
            grid=(bn // tr,),
            in_specs=[
                pl.BlockSpec((tr, f_in_p), lambda r: (r, 0)),
                pl.BlockSpec((f_in_p, f_out_p), lambda r: (0, 0)),
            ],
            out_specs=pl.BlockSpec((tr, f_out_p), lambda r: (r, 0)),
        ),
        compiler_params=pltpu.CompilerParams(
            dimension_semantics=("parallel",),
            vmem_limit_bytes=limit),
        cost_estimate=cost1,
    )(text2d, w_bf)
    hidden = hidden2d.reshape(B, n_col_p, f_out_p)

    # --- stage 2: tiled adjacency aggregation + normalization + bias --------
    if hidden_resident:
        hid_spec = pl.BlockSpec((pl.Squeezed(), n_col_p, f_out_p),
                                lambda b, i, k: (b, 0, 0))
    else:
        hid_spec = pl.BlockSpec((pl.Squeezed(), tk, f_out_p),
                                lambda b, i, k: (b, k, 0))

    cost2 = pl.CostEstimate(
        flops=2 * B * n_row_p * n_col_p * f_out_p,
        transcendentals=B * n_row_p,
        bytes_accessed=B * (n_row_p * n_col_p * 4
                            + n_col_p * f_out_p * 2
                            + n_row_p * f_out_p * 4))

    out_p = pl.pallas_call(
        functools.partial(_aggregate_kernel, tk=tk, ones_col=ones_col,
                          hidden_resident=hidden_resident),
        out_shape=jax.ShapeDtypeStruct((B, n_row_p, f_out_p), jnp.float32),
        grid_spec=pltpu.PrefetchScalarGridSpec(
            num_scalar_prefetch=0,
            grid=(B, n_row_p // tm, n_col_p // tk),
            in_specs=[
                pl.BlockSpec((pl.Squeezed(), tm, tk),
                             lambda b, i, k: (b, i, k)),        # adj (f32)
                hid_spec,                                        # hidden (bf16)
                pl.BlockSpec((1, f_out_p), lambda b, i, k: (0, 0)),  # bias
            ],
            out_specs=pl.BlockSpec((pl.Squeezed(), tm, f_out_p),
                                   lambda b, i, k: (b, i, 0)),
        ),
        compiler_params=pltpu.CompilerParams(
            dimension_semantics=("parallel", "parallel", "arbitrary"),
            vmem_limit_bytes=limit),
        cost_estimate=cost2,
    )(adj_p, hidden, bias_p)

    # Drop node/feature padding.
    return out_p[:, :N, :F_out]


def _reference(text, adj, weight, bias):
    hidden = jnp.matmul(text, weight)
    denom = jnp.sum(adj, axis=2, keepdims=True) + 1.0
    out = jnp.matmul(adj, hidden) / denom
    if bias is not None:
        out = out + bias
    return out


if __name__ == "__main__":
    # Small shapes consistent with the module's forward pass.
    B, N, F_in, F_out = 2, 16, 32, 32

    key = jax.random.PRNGKey(0)
    k_text, k_adj, k_w, k_b = jax.random.split(key, 4)

    text = jax.random.normal(k_text, (B, N, F_in), dtype=jnp.float32)
    # Non-negative "adjacency"-like matrix so denom stays well-behaved.
    adj = jax.random.uniform(k_adj, (B, N, N), dtype=jnp.float32)

    # Deterministic parameter init (stand-in for nn.Parameter init).
    weight = jax.random.normal(k_w, (F_in, F_out), dtype=jnp.float32) * 0.1
    bias = jax.random.normal(k_b, (F_out,), dtype=jnp.float32) * 0.1

    out = jax.block_until_ready(graph_convolution(text, adj, weight, bias))
    ref = _reference(text, adj, weight, bias)
    assert out.shape == (B, N, F_out)
    # bf16 MXU feed (f32 accumulation) => loosened tolerance.
    assert jnp.allclose(out, ref, atol=3e-2, rtol=3e-2), "mismatch vs reference"

    # bias=None path.
    out_nb = jax.block_until_ready(graph_convolution(text, adj, weight, None))
    ref_nb = _reference(text, adj, weight, None)
    assert jnp.allclose(out_nb, ref_nb, atol=3e-2, rtol=3e-2), "mismatch (no bias)"

    # Larger N: exercises the k-reduction accumulation loop and the
    # non-resident hidden path.
    B2, N2, Fi2, Fo2 = 2, 256, 48, 64
    k2 = jax.random.split(jax.random.PRNGKey(0), 4)
    text2 = jax.random.normal(k2[0], (B2, N2, Fi2), dtype=jnp.float32)
    adj2 = jax.random.uniform(k2[1], (B2, N2, N2), dtype=jnp.float32)
    w2 = jax.random.normal(k2[2], (Fi2, Fo2), dtype=jnp.float32) * 0.1
    b2 = jax.random.normal(k2[3], (Fo2,), dtype=jnp.float32) * 0.1
    out2 = jax.block_until_ready(
        graph_convolution(text2, adj2, w2, b2, tm=128, tk=128,
                          force_hidden_resident=False))
    ref2 = _reference(text2, adj2, w2, b2)
    assert jnp.allclose(out2, ref2, atol=3e-2, rtol=3e-2), "mismatch (tiled)"

    print("KERNEL_OK")
</pallas_src>

<mosaic_0001>
module attributes {stable_mosaic.version = 11 : i64} {
  func.func @_aggregate_kernel(%arg0: i32, %arg1: i32, %arg2: i32, %arg3: memref<1x16x128xf32, #tpu.memory_space<vmem>>, %arg4: memref<1x128x128xbf16, #tpu.memory_space<vmem>>, %arg5: memref<1x128xf32, #tpu.memory_space<vmem>>, %arg6: memref<1x16x128xf32, #tpu.memory_space<vmem>>) attributes {dimension_semantics = [#tpu.dimension_semantics<parallel>, #tpu.dimension_semantics<parallel>, #tpu.dimension_semantics<arbitrary>], iteration_bounds = array<i64: 2, 1, 1>, scalar_prefetch = 0 : i64, scratch_operands = 0 : i64, tpu.core_type = #tpu.core_type<tc>, window_params = [{transform_indices = @transform_0, window_bounds = array<i64: 1, 16, 128>}, {transform_indices = @transform_1, window_bounds = array<i64: 1, 128, 128>}, {pipeline_mode = #tpu.pipeline_mode<synchronous>, transform_indices = @transform_2, window_bounds = array<i64: 1, 128>}, {transform_indices = @transform_3, window_bounds = array<i64: 1, 16, 128>}]} {
    %c0_i32 = arith.constant 0 : i32
    %0 = arith.cmpi eq, %arg2, %c0_i32 : i32
    %1 = arith.extui %0 : i1 to i32
    %c0_i32_0 = arith.constant 0 : i32
    %2 = arith.cmpi ne, %1, %c0_i32_0 : i32
    scf.if %2 {
      %cst_13 = arith.constant 0.000000e+00 : f32
      %21 = vector.broadcast %cst_13 : f32 to vector<16x128xf32>
      %c0_14 = arith.constant 0 : index
      %c0_15 = arith.constant 0 : index
      %c0_16 = arith.constant 0 : index
      %22 = vector.load %arg6[%c0_14, %c0_15, %c0_16] : memref<1x16x128xf32, #tpu.memory_space<vmem>>, vector<1x16x128xf32>
      %23 = vector.shape_cast %22 : vector<1x16x128xf32> to vector<16x128xf32>
      %24 = vector.shape_cast %21 : vector<16x128xf32> to vector<1x16x128xf32>
      tpu.vector_store %arg6[%c0_14, %c0_15, %c0_16], %24 {strides = array<i32>} : memref<1x16x128xf32, #tpu.memory_space<vmem>>, vector<1x16x128xf32>,
    } else {
    }
    %c0 = arith.constant 0 : index
    %c0_1 = arith.constant 0 : index
    %c0_2 = arith.constant 0 : index
    %3 = vector.load %arg3[%c0, %c0_1, %c0_2] : memref<1x16x128xf32, #tpu.memory_space<vmem>>, vector<1x16x128xf32>
    %4 = vector.shape_cast %3 : vector<1x16x128xf32> to vector<16x128xf32>
    %5 = arith.truncf %4 : vector<16x128xf32> to vector<16x128xbf16>
    %c128_i32 = arith.constant 128 : i32
    %6 = arith.muli %arg2, %c128_i32 : i32
    %7 = tpu.assume_multiple %6, 128 : i32
    %c0_3 = arith.constant 0 : index
    %8 = arith.index_cast %7 : i32 to index
    %c0_4 = arith.constant 0 : index
    %9 = vector.load %arg4[%c0_3, %8, %c0_4] : memref<1x128x128xbf16, #tpu.memory_space<vmem>>, vector<1x128x128xbf16>
    %10 = vector.shape_cast %9 : vector<1x128x128xbf16> to vector<128x128xbf16>
    %c0_5 = arith.constant 0 : index
    %c0_6 = arith.constant 0 : index
    %c0_7 = arith.constant 0 : index
    %11 = vector.load %arg6[%c0_5, %c0_6, %c0_7] : memref<1x16x128xf32, #tpu.memory_space<vmem>>, vector<1x16x128xf32>
    %12 = vector.shape_cast %11 : vector<1x16x128xf32> to vector<16x128xf32>
    %cst = arith.constant dense<0.000000e+00> : vector<16x128xf32>
    %13 = tpu.matmul %5, %10, %cst {dimension_numbers = #tpu.dot_dimension_numbers<[1], [0], [0], [1], [0, 0, 1, 1], [], []>} : vector<16x128xbf16>, vector<128x128xbf16>, vector<16x128xf32> -> vector<16x128xf32>
    %14 = arith.addf %12, %13 : vector<16x128xf32>
    %c0_8 = arith.constant 0 : index
    %c0_9 = arith.constant 0 : index
    %c0_10 = arith.constant 0 : index
    %15 = vector.load %arg6[%c0_8, %c0_9, %c0_10] : memref<1x16x128xf32, #tpu.memory_space<vmem>>, vector<1x16x128xf32>
    %16 = vector.shape_cast %15 : vector<1x16x128xf32> to vector<16x128xf32>
    %17 = vector.shape_cast %14 : vector<16x128xf32> to vector<1x16x128xf32>
    tpu.vector_store %arg6[%c0_8, %c0_9, %c0_10], %17 {strides = array<i32>} : memref<1x16x128xf32, #tpu.memory_space<vmem>>, vector<1x16x128xf32>,
    %c0_i32_11 = arith.constant 0 : i32
    %18 = arith.cmpi eq, %arg2, %c0_i32_11 : i32
    %19 = arith.extui %18 : i1 to i32
    %c0_i32_12 = arith.constant 0 : i32
    %20 = arith.cmpi ne, %19, %c0_i32_12 : i32
    scf.if %20 {
      %c0_13 = arith.constant 0 : index
      %c0_14 = arith.constant 0 : index
      %c0_15 = arith.constant 0 : index
      %21 = vector.load %arg6[%c0_13, %c0_14, %c0_15] : memref<1x16x128xf32, #tpu.memory_space<vmem>>, vector<1x16x128xf32>
      %22 = vector.shape_cast %21 : vector<1x16x128xf32> to vector<16x128xf32>
      %23 = vector.extract_strided_slice %22 {offsets = [0, 32], sizes = [16, 1], strides = [1, 1]} : vector<16x128xf32> to vector<16x1xf32>
      %cst_16 = arith.constant 1.000000e+00 : f32
      %24 = vector.broadcast %cst_16 : f32 to vector<16x1xf32>
      %25 = arith.addf %23, %24 : vector<16x1xf32>
      %26 = tpu.reciprocal %25 : vector<16x1xf32> -> vector<16x1xf32>
      %27 = vector.broadcast %26 : vector<16x1xf32> to vector<16x128xf32>
      %28 = arith.mulf %22, %27 : vector<16x128xf32>
      %c0_17 = arith.constant 0 : index
      %c0_18 = arith.constant 0 : index
      %29 = vector.load %arg5[%c0_17, %c0_18] : memref<1x128xf32, #tpu.memory_space<vmem>>, vector<1x128xf32>
      %30 = vector.broadcast %29 : vector<1x128xf32> to vector<16x128xf32>
      %31 = arith.addf %28, %30 : vector<16x128xf32>
      %c0_19 = arith.constant 0 : index
      %c0_20 = arith.constant 0 : index
      %c0_21 = arith.constant 0 : index
      %32 = vector.load %arg6[%c0_19, %c0_20, %c0_21] : memref<1x16x128xf32, #tpu.memory_space<vmem>>, vector<1x16x128xf32>
      %33 = vector.shape_cast %32 : vector<1x16x128xf32> to vector<16x128xf32>
      %34 = vector.shape_cast %31 : vector<16x128xf32> to vector<1x16x128xf32>
      tpu.vector_store %arg6[%c0_19, %c0_20, %c0_21], %34 {strides = array<i32>} : memref<1x16x128xf32, #tpu.memory_space<vmem>>, vector<1x16x128xf32>,
    } else {
    }
    return
  }
  func.func @transform_0(%arg0: i32, %arg1: i32, %arg2: i32) -> (i32, i32, i32) {
    %c0_i32 = arith.constant 0 : i32
    return %arg0, %arg1, %arg2 : i32, i32, i32
  }
  func.func @transform_1(%arg0: i32, %arg1: i32, %arg2: i32) -> (i32, i32, i32) {
    %c0_i32 = arith.constant 0 : i32
    %c0_i32_0 = arith.constant 0 : i32
    %c0_i32_1 = arith.constant 0 : i32
    return %arg0, %c0_i32, %c0_i32_0 : i32, i32, i32
  }
  func.func @transform_2(%arg0: i32, %arg1: i32, %arg2: i32) -> (i32, i32) {
    %c0_i32 = arith.constant 0 : i32
    %c0_i32_0 = arith.constant 0 : i32
    %c0_i32_1 = arith.constant 0 : i32
    return %c0_i32, %c0_i32_0 : i32, i32
  }
  func.func @transform_3(%arg0: i32, %arg1: i32, %arg2: i32) -> (i32, i32, i32) {
    %c0_i32 = arith.constant 0 : i32
    %c0_i32_0 = arith.constant 0 : i32
    return %arg0, %arg1, %c0_i32 : i32, i32, i32
  }
}

module attributes {stable_mosaic.version = 11 : i64} {
  func.func @_hidden_kernel(%arg0: i32, %arg1: memref<256x128xf32, #tpu.memory_space<vmem>>, %arg2: memref<128x128xbf16, #tpu.memory_space<vmem>>, %arg3: memref<256x128xbf16, #tpu.memory_space<vmem>>) attributes {dimension_semantics = [#tpu.dimension_semantics<parallel>], iteration_bounds = array<i64: 1>, scalar_prefetch = 0 : i64, scratch_operands = 0 : i64, tpu.core_type = #tpu.core_type<tc>, window_params = [{transform_indices = @transform_0, window_bounds = array<i64: 256, 128>}, {pipeline_mode = #tpu.pipeline_mode<synchronous>, transform_indices = @transform_1, window_bounds = array<i64: 128, 128>}, {transform_indices = @transform_2, window_bounds = array<i64: 256, 128>}]} {
    %c0 = arith.constant 0 : index
    %c0_0 = arith.constant 0 : index
    %0 = vector.load %arg1[%c0, %c0_0] : memref<256x128xf32, #tpu.memory_space<vmem>>, vector<256x128xf32>
    %1 = arith.truncf %0 : vector<256x128xf32> to vector<256x128xbf16>
    %c0_1 = arith.constant 0 : index
    %c0_2 = arith.constant 0 : index
    %2 = vector.load %arg2[%c0_1, %c0_2] : memref<128x128xbf16, #tpu.memory_space<vmem>>, vector<128x128xbf16>
    %cst = arith.constant dense<0.000000e+00> : vector<256x128xf32>
    %3 = tpu.matmul %1, %2, %cst {dimension_numbers = #tpu.dot_dimension_numbers<[1], [0], [0], [1], [0, 0, 1, 1], [], []>} : vector<256x128xbf16>, vector<128x128xbf16>, vector<256x128xf32> -> vector<256x128xf32>
    %4 = tpu.iota {dimensions = array<i32: 1>} : vector<256x128xi32>
    %c32_i32 = arith.constant 32 : i32
    %5 = vector.broadcast %c32_i32 : i32 to vector<256x128xi32>
    %6 = arith.cmpi eq, %4, %5 : vector<256x128xi32>
    %cst_3 = arith.constant 1.000000e+00 : f32
    %7 = vector.broadcast %cst_3 : f32 to vector<256x128xf32>
    %8 = arith.select %6, %7, %3 : vector<256x128xi1>, vector<256x128xf32>
    %9 = arith.truncf %8 : vector<256x128xf32> to vector<256x128xbf16>
    %c0_4 = arith.constant 0 : index
    %c0_5 = arith.constant 0 : index
    %10 = vector.load %arg3[%c0_4, %c0_5] : memref<256x128xbf16, #tpu.memory_space<vmem>>, vector<256x128xbf16>
    tpu.vector_store %arg3[%c0_4, %c0_5], %9 {strides = array<i32>} : memref<256x128xbf16, #tpu.memory_space<vmem>>, vector<256x128xbf16>,
    return
  }
  func.func @transform_0(%arg0: i32) -> (i32, i32) {
    %c0_i32 = arith.constant 0 : i32
    %c0_i32_0 = arith.constant 0 : i32
    return %arg0, %c0_i32 : i32, i32
  }
  func.func @transform_1(%arg0: i32) -> (i32, i32) {
    %c0_i32 = arith.constant 0 : i32
    %c0_i32_0 = arith.constant 0 : i32
    %c0_i32_1 = arith.constant 0 : i32
    return %c0_i32, %c0_i32_0 : i32, i32
  }
  func.func @transform_2(%arg0: i32) -> (i32, i32) {
    %c0_i32 = arith.constant 0 : i32
    %c0_i32_0 = arith.constant 0 : i32
    return %arg0, %c0_i32 : i32, i32
  }
}

</mosaic_0001>

<bundles_post_ra>
// kernel: graph_convolution.3
= control target key start
LH: loop header
LB: loop body
LE: loop exit
PB: predicated region body
PF: predicated region fallthrough
CT: control target
= control target key end

     0   :  { %8 = vsyncpa [#allocation3], 0  ;;  %s837_s0 = inlined_call_operand.vmem [shape: f32[2,16,128], index: 0, kind: input, shape index: {}]   ;;  %s838_s1 = inlined_call_operand.vmem [shape: bf16[2,128,128], index: 1, kind: input, shape index: {}]   ;;  %s839_s2 = inlined_call_operand.vmem [shape: f32[1,128], index: 2, kind: input, shape index: {}]   ;;  %s840_s3 = inlined_call_operand.hbm [shape: f32[2,16,128], index: 3, kind: output, shape index: {}]  }
   0x1   :  { %10 = vsyncpa [#allocation3 + $0x1], 0  ;;  %s734_s12 = smov 0   ;;  %s736_s13 = smov 0  }
   0x2   :  { %s738_s14 = smov 0   ;;  %s740_s15 = smov 0  }
   0x3   :  { %s742_s16 = smov 0   ;;  %s744_s17 = smov 0  }
   0x4 LB: > { %s508_s18 = sadd.s32 4294967295, %s709_s17   ;;  %s509_s19 = sadd.s32 4294967294, %s709_s17   ;;  %s709_s17 = sphi %s744_s17, %s16_s17   ;;  %s705_s16 = sphi %s742_s16, %s847_s16   ;;  %s701_s15 = sphi %s740_s15, %s846_s15   ;;  %s697_s14 = sphi %s738_s14, %s845_s14   ;;  %s693_s13 = sphi %s736_s13, %s844_s13   ;;  %s689_s12 = sphi %s734_s12, %s843_s12  }
   0x5   : > { %s35_s20 = sadd.s32 1, %s705_s16  ;;  %s121_s21 = sadd.s32 1, %s697_s14 }
   0x6   : > { %p37_p0 = scmp.ge.s32.totalorder %s35_s20, 2  ;;  %p131_p1 = scmp.ne.s32.totalorder %s697_s14, %s693_s13 }
   0x7   : > { %p132_p2 = scmp.eq.s32.totalorder %s508_s18, 1  ;;  %p137_p3 = scmp.ne.s32.totalorder %s693_s13, %s689_s12 }
   0x8   : > { %s849_s20 = smov (%p37_p0, %s35_s20), 0  ;;  %p138_p5 = scmp.eq.s32.totalorder %s509_s19, 1 }
   0x9   : > { %p774_p4 = por %p132_p2, %p131_p1  ;;  %s116_s23 = ssub.s32 %s705_s16, %s849_s20 }
   0xa   : > { %p512_p6 = scmp.ge.s32.totalorder %s709_s17, 1  ;;  %p119_p7 = scmp.eq.s32.totalorder %s116_s23, 0 }
   0xb   : > { %p781_p8 = por %p138_p5, %p137_p3  ;;  %p183_p9 = scmp.lt.s32.totalorder %s709_s17, 3 }
   0xc   : > { %s787_s25 = scalar_select %p119_p7, %s697_s14, %s121_s21  }
   0xd   : > { %p184_p10 = pnand %p512_p6, %p183_p9 }
   0xe   : > { %p220_p11 = scmp.lt.s32.totalorder (!%p184_p10), %s701_s15, 1  ;;  %s216_s8 = sand.u32 (!%p184_p10), 1, %s693_s13  }
   0xf   : > { %187 = sbr.rel (%p184_p10) target bundleno = 332 (0x14c), region = 32  ;;  %s513_s9 = sshll.u32 (!%p184_p10), %s216_s8, 4 }
  0x10   : > { %s565_s18 = sshll.u32 (!%p184_p10), %s701_s15, 4  ;;  %s392_s29 = scalar_lea.sflag (!%p184_p10), [#allocation3], %s216_s8 }
  0x11   : > { %s405_s23 = scalar_lea.hbm (!%p184_p10), %s840_s3, %s565_s18  ;;  %s651_s6 = scalar_lea.hbm (!%p184_p10), %s840_s3, 32 }
  0x12   : > { %s408_s28 = sshll.u32 (!%p184_p10), %s405_s23, 4  ;;  %s409_s28 = int_to_ptr.hbm [resolvable:$true] %s408_s28 }
  0x14   : > { %s221_s26 = scalar_select %p220_p11, %s701_s15, 1  ;;  %v711_v11 = vmov 32   ;;  %v626_v36 = vld [vmem:[%s839_s2] ss:$0 sm:$0xff] }
  0x15   : > { %625 = vset.pattern.permute.xlu0 %v711_v11 }
  0x16   : > { %s556_s27 = sshll.u32 %s221_s26, 6  ;;  %s555_s4 = sshll.u32 %s221_s26, 4 }
  0x17   : > { %s236_s30 = scalar_lea.vmem %s838_s1, %s556_s27  ;;  %s230_s7 = scalar_lea.vmem %s837_s0, %s555_s4 }
  0x18   : > { %v564_v0 = vld [vmem:[%s236_s30 + $0x38] sm:$0xff]  ;;  %v563_v1 = vld [vmem:[%s236_s30 + $0x30] sm:$0xff]  ;;  %v562_v2 = vld [vmem:[%s236_s30 + $0x28] sm:$0xff]  ;;  %s218_s26 = scalar_lea.vmem [#allocation2], %s513_s9 }
  0x19   : > { %318 = vmatpush.bf16.msra.mxu0 %v564_v0  ;;  %v561_v3 = vld [vmem:[%s236_s30 + $0x20] sm:$0xff]  ;;  %v560_v4 = vld [vmem:[%s236_s30 + $0x18] sm:$0xff]  ;;  %v559_v5 = vld [vmem:[%s236_s30 + $0x10] sm:$0xff]  ;;  %s406_s27 = sshll.u32 %s218_s26, 4  ;;  %s407_s27 = int_to_ptr.vmem [resolvable:$true] %s406_s27 }
  0x1a   : > { %v558_v6 = vld [vmem:[%s236_s30 + $0x8] sm:$0xff]  ;;  %v557_v7 = vld [vmem:[%s236_s30] sm:$0xff]  ;;  %s645_s30 = sshra.s32 %s409_s28, 4  ;;  %s646_s30 = int_to_ptr.hbm [resolvable:$true] %s645_s30 }
  0x1b   : > { %v244_v8 = vld [vmem:[%s230_s7] sm:$0xff]  ;;  %v245_v9 = vld [vmem:[%s230_s7 + $0x8] sm:$0xff]  ;;  %s647_s15 = scalar_lea.hbm %s646_s30, 16  ;;  %p652_p1 = scmp.lt.s32.totalorder %s646_s30, %s840_s3 }
  0x1c   : > { %v246_v10 = vpack.c.bf16 %v245_v9, %v244_v8  ;;  %p648_p12 = scmp.ne.s32.totalorder %s646_s30, %s647_s15  ;;  %p653_p2 = scmp.lt.s32.totalorder %s651_s6, %s647_s15 }
  0x1d   : > { %319 = vmatpush.bf16.msra.mxu0 %v563_v1 }
  0x1e   : > { %p649_p13 = pnand %p648_p12, %p774_p4  ;;  %p654_p3 = por %p653_p2, %p652_p1 }
  0x20   : > { %p650_p0 = pneg %p649_p13 }
  0x21   : > { %320 = vmatpush.bf16.msra.mxu0 %v562_v2 }
  0x22   : > { %p655_p5 = pnand %p654_p3, %p650_p0 }
  0x25   : > { %321 = vmatpush.bf16.msra.mxu0 %v561_v3 }
  0x29   : > { %322 = vmatpush.bf16.msra.mxu0 %v560_v4 }
  0x2d   : > { %323 = vmatpush.bf16.msra.mxu0 %v559_v5 }
  0x31   : > { %324 = vmatpush.bf16.msra.mxu0 %v558_v6 }
  0x35   : > { %325 = vmatpush.bf16.msra.mxu0 %v557_v7 }
  0x38   : > { %326 = vmatmul.bf16.vlgmr.msra.gmra.mxu0 %v246_v10 }
  0xb5   : > { %v327_v12 = vpop.f32.mrf.mxu0 }
  0xb6   : > { %v341_v13 = vadd.f32 1.0, %v327_v12 }
  0xb8   : > { %627 = vrcp.f32 %v341_v13  ;;  %v354_v19 = vand.u32 2147483648, %v341_v13  ;;  %v352_v21 = vand.u32 2147483647, %v341_v13  ;;  %vm348_vm1 = vweird.f32 %v341_v13 }
  0xba   : > { %v355_v24 = vor.u32 1.1754944e-38, %v354_v19  ;;  %vm353_vm3 = vcmp.eq.f32.partialorder %v352_v21, 8.507059e+37 }
  0xbd   : > { %v329_v14 = vpop.f32.mrf.mxu0 }
  0xbe   : > { %v628_v15 = vpop.eup %627  ;;  %v342_v16 = vadd.f32 1.0, %v329_v14 }
  0xbf   : > { %v344_v17 = vmul.f32 %v628_v15, %v341_v13  ;;  %vm349_vm0 = vweird.f32 %v628_v15 }
  0xc0   : > { %629 = vrcp.f32 %v342_v16  ;;  %vm350_vm2 = vmor %vm348_vm1, %vm349_vm0  ;;  %v368_v29 = vand.u32 2147483648, %v342_v16  ;;  %v366_v31 = vand.u32 2147483647, %v342_v16  ;;  %vm362_vm5 = vweird.f32 %v342_v16 }
  0xc1   : > { %v345_v18 = vsub.f32 1.0, %v344_v17 }
  0xc2   : > { %v369_v33 = vor.u32 1.1754944e-38, %v368_v29  ;;  %vm367_vm7 = vcmp.eq.f32.partialorder %v366_v31, 8.507059e+37 }
  0xc3   : > { %v346_v20 = vmul.f32 %v628_v15, %v345_v18 }
  0xc5   : > { %v347_v22 = vadd.f32 %v628_v15, %v346_v20 }
  0xc6   : > { %v630_v23 = vpop.eup %629 }
  0xc7   : > { %v351_v25 = vsel %vm350_vm2, %v628_v15, %v347_v22  ;;  %v358_v26 = vmul.f32 %v630_v23, %v342_v16  ;;  %vm363_vm4 = vweird.f32 %v630_v23 }
  0xc8   : > { %v356_v27 = vsel %vm353_vm3, %v355_v24, %v351_v25  ;;  %vm364_vm6 = vmor %vm362_vm5, %vm363_vm4 }
  0xc9   : > { %373 = vperm.xlu0 %625, %v356_v27   ;;  %v359_v28 = vsub.f32 1.0, %v358_v26 }
  0xcb   : > { %v360_v30 = vmul.f32 %v630_v23, %v359_v28 }
  0xcd   : > { %v361_v32 = vadd.f32 %v630_v23, %v360_v30 }
  0xcf   : > { %v365_v34 = vsel %vm364_vm6, %v630_v23, %v361_v32 }
  0xd0   : > { %v370_v35 = vsel %vm367_vm7, %v369_v33, %v365_v34 }
  0xd1   : > { %378 = vperm.xlu0 %625, %v370_v35  }
 0x13b   : > { %v374_v37 = vpop.permute.xlu0 %373 }
 0x13c   : > { %v381_v38 = vmul.f32 %v374_v37, %v327_v12 }
 0x13e   : > { %v387_v39 = vadd.f32 %v626_v36, %v381_v38 }
 0x140   : > { %389 = vst [vmem:[%s218_s26] sm:$0xff] %v387_v39 }
 0x143   : > { %v379_v40 = vpop.permute.xlu0 %378 }
 0x144   : > { %v382_v41 = vmul.f32 %v379_v40, %v329_v14 }
 0x146   : > { %v388_v42 = vadd.f32 %v626_v36, %v382_v41 }
 0x148   : > { %390 = vst [vmem:[%s218_s26 + $0x8] sm:$0xff] %v388_v42 }
 0x149   : > { %658 = shalt.err (!%p655_p5)
}
 0x14a   : > { %s712_s8 = smov 128   ;;  %s713_s10 = smov 8  }
 0x14b   : > { %566 = dma.vmem_to_hbm [thread:$0]  (%p774_p4), %s407_s27, 256, %s409_s28, %s392_s29, %s712_s8, %s712_s8, %s713_s10  }
 0x14c PF: > { %p572_p6 = scmp.ge.s32.totalorder %s709_s17, 2  ;;  %s423_s11 = sand.u32 1, %s689_s12  }
 0x14d   : > { %s424_s18 = scalar_lea.sflag [#allocation3], %s423_s11 }
 0x14e   : > { %p569_p7 = pnand %p572_p6, %p781_p8 }
 0x150   : > { %p570_p9 = pneg %p569_p7 }
 0x152   : > { %684 = dma.done.wait (%p570_p9), %s424_s18, 256  }
 0x153   : > { %686 = vsyncadd (%p570_p9), %s424_s18, 4294967040  ;;  %s16_s17 = sadd.s32 1, %s709_s17   ;;  %s843_s12 = smov %s693_s13 }
 0x154   : > { %p13_p10 = scmp.ge.s32.totalorder %s16_s17, 4   ;;  %s844_s13 = smov %s697_s14 }
 0x155   : > { %s845_s14 = smov %s787_s25  ;;  %s846_s15 = smov %s705_s16 }
 0x156   : > { %s847_s16 = smov %s849_s20  ;;  %15 = sbr.rel (!%p13_p10) target bundleno = 4 (0x4), region = 79 }
 0x15b   :  { %430 = vsyncpa [#allocation3], 1 }
 0x15c   :  { %432 = vsyncpa [#allocation3 + $0x1], 1 }

// kernel: graph_convolution.2
= control target key start
LH: loop header
LB: loop body
LE: loop exit
PB: predicated region body
PF: predicated region fallthrough
CT: control target
= control target key end

     0   :  { %v212_v56 = vlaneseq  ;;  %s724_s1 = inlined_call_operand.vmem [shape: bf16[128,128], index: 1, kind: input, shape index: {}]   ;;  %s725_s0 = inlined_call_operand.vmem [shape: f32[256,128], index: 0, kind: input, shape index: {}]   ;;  %s726_s2 = inlined_call_operand.vmem [shape: bf16[256,128], index: 2, kind: output, shape index: {}]  }
   0x1   :  { %v354_v0 = vld [vmem:[%s724_s1 + $0x38] sm:$0xff]  ;;  %v353_v1 = vld [vmem:[%s724_s1 + $0x30] sm:$0xff]  ;;  %v352_v2 = vld [vmem:[%s724_s1 + $0x28] sm:$0xff] }
   0x2   :  { %123 = vmatpush.bf16.msra.mxu0 %v354_v0  ;;  %450 = vmatpush.bf16.msra.mxu1 %v354_v0  ;;  %v351_v3 = vld [vmem:[%s724_s1 + $0x20] sm:$0xff]  ;;  %v350_v4 = vld [vmem:[%s724_s1 + $0x18] sm:$0xff]  ;;  %v349_v5 = vld [vmem:[%s724_s1 + $0x10] sm:$0xff]  ;;  %v609_v59 = vand.u32 127, %v212_v56 }
   0x3   :  { %451 = vmatpush.bf16.msra.mxu2 %v354_v0  ;;  %452 = vmatpush.bf16.msra.mxu3 %v354_v0  ;;  %v348_v6 = vld [vmem:[%s724_s1 + $0x8] sm:$0xff]  ;;  %v347_v7 = vld [vmem:[%s724_s1] sm:$0xff]  ;;  %v13_v20 = vld [vmem:[%s725_s0 + $0x10] sm:$0xff] }
   0x4   :  { %v11_v8 = vld [vmem:[%s725_s0] sm:$0xff]  ;;  %v12_v9 = vld [vmem:[%s725_s0 + $0x8] sm:$0xff]  ;;  %v14_v21 = vld [vmem:[%s725_s0 + $0x18] sm:$0xff]  ;;  %vm214_vm0 = vcmp.eq.s32.totalorder %v609_v59, 32 }
   0x5   :  { %v19_v10 = vld [vmem:[%s725_s0 + $0x40] sm:$0xff]  ;;  %v20_v11 = vld [vmem:[%s725_s0 + $0x48] sm:$0xff]  ;;  %v43_v16 = vpack.c.bf16 %v12_v9, %v11_v8  ;;  %v21_v22 = vld [vmem:[%s725_s0 + $0x50] sm:$0xff]  ;;  %v44_v28 = vpack.c.bf16 %v14_v21, %v13_v20 }
   0x6   :  { %124 = vmatpush.bf16.msra.mxu0 %v353_v1  ;;  %453 = vmatpush.bf16.msra.mxu1 %v353_v1  ;;  %v27_v12 = vld [vmem:[%s725_s0 + $0x80] sm:$0xff]  ;;  %v28_v13 = vld [vmem:[%s725_s0 + $0x88] sm:$0xff]  ;;  %v47_v17 = vpack.c.bf16 %v20_v11, %v19_v10  ;;  %v22_v23 = vld [vmem:[%s725_s0 + $0x58] sm:$0xff] }
   0x7   :  { %454 = vmatpush.bf16.msra.mxu2 %v353_v1  ;;  %455 = vmatpush.bf16.msra.mxu3 %v353_v1  ;;  %v35_v14 = vld [vmem:[%s725_s0 + $0xc0] sm:$0xff]  ;;  %v36_v15 = vld [vmem:[%s725_s0 + $0xc8] sm:$0xff]  ;;  %v51_v18 = vpack.c.bf16 %v28_v13, %v27_v12  ;;  %v29_v24 = vld [vmem:[%s725_s0 + $0x90] sm:$0xff]  ;;  %v48_v29 = vpack.c.bf16 %v22_v23, %v21_v22 }
   0x8   :  { %v55_v19 = vpack.c.bf16 %v36_v15, %v35_v14  ;;  %v30_v25 = vld [vmem:[%s725_s0 + $0x98] sm:$0xff]  ;;  %v37_v26 = vld [vmem:[%s725_s0 + $0xd0] sm:$0xff]  ;;  %v15_v32 = vld [vmem:[%s725_s0 + $0x20] sm:$0xff] }
   0x9   :  { %v38_v27 = vld [vmem:[%s725_s0 + $0xd8] sm:$0xff]  ;;  %v52_v30 = vpack.c.bf16 %v30_v25, %v29_v24  ;;  %v16_v33 = vld [vmem:[%s725_s0 + $0x28] sm:$0xff]  ;;  %v23_v34 = vld [vmem:[%s725_s0 + $0x60] sm:$0xff] }
   0xa   :  { %125 = vmatpush.bf16.msra.mxu0 %v352_v2  ;;  %456 = vmatpush.bf16.msra.mxu1 %v352_v2  ;;  %v56_v31 = vpack.c.bf16 %v38_v27, %v37_v26  ;;  %v24_v35 = vld [vmem:[%s725_s0 + $0x68] sm:$0xff]  ;;  %v31_v36 = vld [vmem:[%s725_s0 + $0xa0] sm:$0xff]  ;;  %v45_v40 = vpack.c.bf16 %v16_v33, %v15_v32  ;;  %v17_v44 = vld [vmem:[%s725_s0 + $0x30] sm:$0xff] }
   0xb   :  { %457 = vmatpush.bf16.msra.mxu2 %v352_v2  ;;  %458 = vmatpush.bf16.msra.mxu3 %v352_v2  ;;  %v32_v37 = vld [vmem:[%s725_s0 + $0xa8] sm:$0xff]  ;;  %v39_v38 = vld [vmem:[%s725_s0 + $0xe0] sm:$0xff]  ;;  %v49_v41 = vpack.c.bf16 %v24_v35, %v23_v34  ;;  %v18_v45 = vld [vmem:[%s725_s0 + $0x38] sm:$0xff] }
   0xc   :  { %v40_v39 = vld [vmem:[%s725_s0 + $0xe8] sm:$0xff]  ;;  %v53_v42 = vpack.c.bf16 %v32_v37, %v31_v36  ;;  %v25_v46 = vld [vmem:[%s725_s0 + $0x70] sm:$0xff]  ;;  %v26_v47 = vld [vmem:[%s725_s0 + $0x78] sm:$0xff]  ;;  %v46_v52 = vpack.c.bf16 %v18_v45, %v17_v44 }
   0xd   :  { %v57_v43 = vpack.c.bf16 %v40_v39, %v39_v38  ;;  %v33_v48 = vld [vmem:[%s725_s0 + $0xb0] sm:$0xff]  ;;  %v34_v49 = vld [vmem:[%s725_s0 + $0xb8] sm:$0xff]  ;;  %v50_v53 = vpack.c.bf16 %v26_v47, %v25_v46 }
   0xe   :  { %126 = vmatpush.bf16.msra.mxu0 %v351_v3  ;;  %459 = vmatpush.bf16.msra.mxu1 %v351_v3  ;;  %v41_v50 = vld [vmem:[%s725_s0 + $0xf0] sm:$0xff]  ;;  %v42_v51 = vld [vmem:[%s725_s0 + $0xf8] sm:$0xff]  ;;  %v54_v54 = vpack.c.bf16 %v34_v49, %v33_v48 }
   0xf   :  { %460 = vmatpush.bf16.msra.mxu2 %v351_v3  ;;  %461 = vmatpush.bf16.msra.mxu3 %v351_v3  ;;  %v58_v55 = vpack.c.bf16 %v42_v51, %v41_v50 }
  0x12   :  { %127 = vmatpush.bf16.msra.mxu0 %v350_v4  ;;  %462 = vmatpush.bf16.msra.mxu1 %v350_v4 }
  0x13   :  { %463 = vmatpush.bf16.msra.mxu2 %v350_v4  ;;  %464 = vmatpush.bf16.msra.mxu3 %v350_v4 }
  0x16   :  { %128 = vmatpush.bf16.msra.mxu0 %v349_v5  ;;  %465 = vmatpush.bf16.msra.mxu1 %v349_v5 }
  0x17   :  { %466 = vmatpush.bf16.msra.mxu2 %v349_v5  ;;  %467 = vmatpush.bf16.msra.mxu3 %v349_v5 }
  0x1a   :  { %129 = vmatpush.bf16.msra.mxu0 %v348_v6  ;;  %468 = vmatpush.bf16.msra.mxu1 %v348_v6 }
  0x1b   :  { %469 = vmatpush.bf16.msra.mxu2 %v348_v6  ;;  %470 = vmatpush.bf16.msra.mxu3 %v348_v6 }
  0x1e   :  { %130 = vmatpush.bf16.msra.mxu0 %v347_v7  ;;  %471 = vmatpush.bf16.msra.mxu1 %v347_v7 }
  0x1f   :  { %472 = vmatpush.bf16.msra.mxu2 %v347_v7  ;;  %473 = vmatpush.bf16.msra.mxu3 %v347_v7 }
  0x21   :  { %131 = vmatmul.bf16.vlgmr.msra.gmra.mxu0 %v43_v16  ;;  %151 = vmatmul.bf16.vlgmr.msra.gmra.mxu1 %v47_v17 }
  0x22   :  { %171 = vmatmul.bf16.vlgmr.msra.gmra.mxu2 %v51_v18  ;;  %191 = vmatmul.bf16.vlgmr.msra.gmra.mxu3 %v55_v19 }
  0x31   :  { %136 = vmatmul.bf16.gmra.mxu0 %v44_v28  ;;  %156 = vmatmul.bf16.gmra.mxu1 %v48_v29 }
  0x32   :  { %176 = vmatmul.bf16.gmra.mxu2 %v52_v30  ;;  %196 = vmatmul.bf16.gmra.mxu3 %v56_v31 }
  0x41   :  { %141 = vmatmul.bf16.gmra.mxu0 %v45_v40  ;;  %161 = vmatmul.bf16.gmra.mxu1 %v49_v41 }
  0x42   :  { %181 = vmatmul.bf16.gmra.mxu2 %v53_v42  ;;  %201 = vmatmul.bf16.gmra.mxu3 %v57_v43 }
  0x51   :  { %146 = vmatmul.bf16.gmra.mxu0 %v46_v52  ;;  %166 = vmatmul.bf16.gmra.mxu1 %v50_v53 }
  0x52   :  { %186 = vmatmul.bf16.gmra.mxu2 %v54_v54  ;;  %206 = vmatmul.bf16.gmra.mxu3 %v58_v55 }
  0x9e   :  { %v132_v57 = vpop.f32.mrf.mxu0  ;;  %v152_v58 = vpop.f32.mrf.mxu1 }
  0x9f   :  { %v215_v0 = vsel %vm214_vm0, 1.0, %v132_v57  ;;  %v223_v1 = vsel %vm214_vm0, 1.0, %v152_v58 }
  0xa5   :  { %v172_v60 = vpop.f32.mrf.mxu2  ;;  %v192_v61 = vpop.f32.mrf.mxu3 }
  0xa6   :  { %v134_v62 = vpop.f32.mrf.mxu0  ;;  %v154_v63 = vpop.f32.mrf.mxu1  ;;  %v231_v8 = vsel %vm214_vm0, 1.0, %v172_v60  ;;  %v239_v9 = vsel %vm214_vm0, 1.0, %v192_v61 }
  0xa7   :  { %v216_v2 = vsel %vm214_vm0, 1.0, %v134_v62  ;;  %v224_v3 = vsel %vm214_vm0, 1.0, %v154_v63 }
  0xa8   :  { %v358_v4 = vpack.c.bf16 %v216_v2, %v215_v0  ;;  %v378_v5 = vpack.c.bf16 %v224_v3, %v223_v1 }
  0xaa   :  { %359 = vst [vmem:[%s726_s2] sm:$0xff] %v358_v4  }
  0xab   :  { %438 = vst [vmem:[%s726_s2 + $0x20] sm:$0xff] %v378_v5  }
  0xad   :  { %v174_v6 = vpop.f32.mrf.mxu2  ;;  %v194_v7 = vpop.f32.mrf.mxu3 }
  0xae   :  { %v232_v10 = vsel %vm214_vm0, 1.0, %v174_v6  ;;  %v240_v11 = vsel %vm214_vm0, 1.0, %v194_v7  ;;  %v137_v12 = vpop.f32.mrf.mxu0  ;;  %v157_v13 = vpop.f32.mrf.mxu1 }
  0xaf   :  { %v398_v14 = vpack.c.bf16 %v232_v10, %v231_v8  ;;  %v418_v15 = vpack.c.bf16 %v240_v11, %v239_v9  ;;  %v217_v20 = vsel %vm214_vm0, 1.0, %v137_v12  ;;  %v225_v21 = vsel %vm214_vm0, 1.0, %v157_v13 }
  0xb1   :  { %442 = vst [vmem:[%s726_s2 + $0x40] sm:$0xff] %v398_v14  }
  0xb2   :  { %446 = vst [vmem:[%s726_s2 + $0x60] sm:$0xff] %v418_v15  }
  0xb5   :  { %v177_v16 = vpop.f32.mrf.mxu2  ;;  %v197_v17 = vpop.f32.mrf.mxu3 }
  0xb6   :  { %v139_v18 = vpop.f32.mrf.mxu0  ;;  %v159_v19 = vpop.f32.mrf.mxu1  ;;  %v233_v28 = vsel %vm214_vm0, 1.0, %v177_v16  ;;  %v241_v29 = vsel %vm214_vm0, 1.0, %v197_v17 }
  0xb7   :  { %v218_v22 = vsel %vm214_vm0, 1.0, %v139_v18  ;;  %v226_v23 = vsel %vm214_vm0, 1.0, %v159_v19 }
  0xb8   :  { %v363_v24 = vpack.c.bf16 %v218_v22, %v217_v20  ;;  %v383_v25 = vpack.c.bf16 %v226_v23, %v225_v21 }
  0xba   :  { %435 = vst [vmem:[%s726_s2 + $0x8] sm:$0xff] %v363_v24  }
  0xbb   :  { %439 = vst [vmem:[%s726_s2 + $0x28] sm:$0xff] %v383_v25  }
  0xbd   :  { %v179_v26 = vpop.f32.mrf.mxu2  ;;  %v199_v27 = vpop.f32.mrf.mxu3 }
  0xbe   :  { %v234_v30 = vsel %vm214_vm0, 1.0, %v179_v26  ;;  %v242_v31 = vsel %vm214_vm0, 1.0, %v199_v27  ;;  %v142_v32 = vpop.f32.mrf.mxu0  ;;  %v162_v33 = vpop.f32.mrf.mxu1 }
  0xbf   :  { %v403_v34 = vpack.c.bf16 %v234_v30, %v233_v28  ;;  %v423_v35 = vpack.c.bf16 %v242_v31, %v241_v29  ;;  %v219_v40 = vsel %vm214_vm0, 1.0, %v142_v32  ;;  %v227_v41 = vsel %vm214_vm0, 1.0, %v162_v33 }
  0xc1   :  { %443 = vst [vmem:[%s726_s2 + $0x48] sm:$0xff] %v403_v34  }
  0xc2   :  { %447 = vst [vmem:[%s726_s2 + $0x68] sm:$0xff] %v423_v35  }
  0xc5   :  { %v182_v36 = vpop.f32.mrf.mxu2  ;;  %v202_v37 = vpop.f32.mrf.mxu3 }
  0xc6   :  { %v144_v38 = vpop.f32.mrf.mxu0  ;;  %v164_v39 = vpop.f32.mrf.mxu1  ;;  %v235_v48 = vsel %vm214_vm0, 1.0, %v182_v36  ;;  %v243_v49 = vsel %vm214_vm0, 1.0, %v202_v37 }
  0xc7   :  { %v220_v42 = vsel %vm214_vm0, 1.0, %v144_v38  ;;  %v228_v43 = vsel %vm214_vm0, 1.0, %v164_v39 }
  0xc8   :  { %v368_v44 = vpack.c.bf16 %v220_v42, %v219_v40  ;;  %v388_v45 = vpack.c.bf16 %v228_v43, %v227_v41 }
  0xca   :  { %436 = vst [vmem:[%s726_s2 + $0x10] sm:$0xff] %v368_v44  }
  0xcb   :  { %440 = vst [vmem:[%s726_s2 + $0x30] sm:$0xff] %v388_v45  }
  0xcd   :  { %v184_v46 = vpop.f32.mrf.mxu2  ;;  %v204_v47 = vpop.f32.mrf.mxu3 }
  0xce   :  { %v236_v50 = vsel %vm214_vm0, 1.0, %v184_v46  ;;  %v244_v51 = vsel %vm214_vm0, 1.0, %v204_v47  ;;  %v147_v52 = vpop.f32.mrf.mxu0  ;;  %v167_v53 = vpop.f32.mrf.mxu1 }
  0xcf   :  { %v408_v54 = vpack.c.bf16 %v236_v50, %v235_v48  ;;  %v428_v55 = vpack.c.bf16 %v244_v51, %v243_v49  ;;  %v221_v61 = vsel %vm214_vm0, 1.0, %v147_v52  ;;  %v229_v62 = vsel %vm214_vm0, 1.0, %v167_v53 }
  0xd1   :  { %444 = vst [vmem:[%s726_s2 + $0x50] sm:$0xff] %v408_v54  }
  0xd2   :  { %448 = vst [vmem:[%s726_s2 + $0x70] sm:$0xff] %v428_v55  }
  0xd5   :  { %v187_v56 = vpop.f32.mrf.mxu2  ;;  %v207_v57 = vpop.f32.mrf.mxu3 }
  0xd6   :  { %v149_v58 = vpop.f32.mrf.mxu0  ;;  %v169_v60 = vpop.f32.mrf.mxu1  ;;  %v237_v5 = vsel %vm214_vm0, 1.0, %v187_v56  ;;  %v245_v6 = vsel %vm214_vm0, 1.0, %v207_v57 }
  0xd7   :  { %v222_v63 = vsel %vm214_vm0, 1.0, %v149_v58  ;;  %v230_v0 = vsel %vm214_vm0, 1.0, %v169_v60 }
  0xd8   :  { %v373_v1 = vpack.c.bf16 %v222_v63, %v221_v61  ;;  %v393_v2 = vpack.c.bf16 %v230_v0, %v229_v62 }
  0xda   :  { %437 = vst [vmem:[%s726_s2 + $0x18] sm:$0xff] %v373_v1  }
  0xdb   :  { %441 = vst [vmem:[%s726_s2 + $0x38] sm:$0xff] %v393_v2  }
  0xdd   :  { %v189_v3 = vpop.f32.mrf.mxu2  ;;  %v209_v4 = vpop.f32.mrf.mxu3 }
  0xde   :  { %v238_v7 = vsel %vm214_vm0, 1.0, %v189_v3  ;;  %v246_v8 = vsel %vm214_vm0, 1.0, %v209_v4 }
  0xdf   :  { %v413_v9 = vpack.c.bf16 %v238_v7, %v237_v5  ;;  %v433_v10 = vpack.c.bf16 %v246_v8, %v245_v6 }
  0xe1   :  { %445 = vst [vmem:[%s726_s2 + $0x58] sm:$0xff] %v413_v9  }
  0xe2   :  { %449 = vst [vmem:[%s726_s2 + $0x78] sm:$0xff] %v433_v10  }

</bundles_post_ra>
